<compile_context>
chip_gen: v6e
topology: v6e:2x2x1
jax: 0.10.0
libtpu: 0.0.40
codegen_flags: <defaults>
</compile_context>

<pallas_src>
import functools

import jax
import jax.numpy as jnp
from jax.experimental import pallas as pl
from jax.experimental.pallas import tpu as pltpu


def _static_pow(x, gamma):
    """x ** gamma; non-negative integer exponents become plain VPU multiplies."""
    g = float(gamma)
    if g.is_integer() and g >= 0:
        n = int(g)
        if n == 0:
            return jnp.ones_like(x)
        acc = None
        base = x
        while n:
            if n & 1:
                acc = base if acc is None else acc * base
            n >>= 1
            if n:
                base = base * base
        return acc
    return x ** gamma  # float exponent: falls back to exp/log on the EUP


def _vmem_budgets():
    """Per-generation (vmem_limit_bytes, per-step tile working-set budget)."""
    cap = None
    try:
        cap = getattr(pltpu.get_tpu_info(), "vmem_capacity_bytes", None)
    except Exception:
        cap = None
    if not cap:
        cap = 64 * 1024 * 1024  # conservative fallback: assume v7x-sized VMEM
    # v5e/v6e (128 MiB physical): limit 64 MiB, tile budget 32 MiB.
    # v7x (64 MiB per TC):        limit 48 MiB, tile budget 24 MiB.
    limit = int(min((cap * 3) // 4, 64 * 1024 * 1024))
    return limit, limit // 2


def _choose_tiles(B, C, S, itemsize, tile_budget):
    """Pick (class_tile, seq_tile).

    seq tile: multiple of 128, preferably 512-1024 lanes.
    class tile: multiple of 8 (<= C), or the full C when C is small / 8-aligned.
    Sized so double-buffered loads + ~5 live f32 temporaries of the (B, ct, ts)
    tile fit the per-generation VMEM budget.  B is the only un-tileable axis
    (softmax reduction over batch).
    """
    S_pad = pl.cdiv(S, 128) * 128
    C_pad = pl.cdiv(C, 8) * 8
    per_elem = B * (2 * itemsize + 5 * 4)   # dbl-buffered load + f32 temporaries

    ts = min(1024, S_pad)
    while True:
        ct = (tile_budget - 2 * B * ts * 4) // (per_elem * ts)
        ct = (ct // 8) * 8
        if ct >= 8 or ts <= 128:
            break
        ts = max(128, ((ts // 2) // 128) * 128)
    ct = int(min(max(ct, 8), C_pad))
    if ct >= C_pad:
        if C < 8 or C % 8 == 0:
            ct = C                       # full class extent, (8,128)-legal
        else:
            ct = max(8, (C // 8) * 8)    # largest multiple of 8 <= C
    # Prefer >=4 grid steps (>=2 per TensorCore on v7x) when S allows it.
    while ts > 128 and pl.cdiv(S, ts) * pl.cdiv(C, ct) < 4:
        ts = max(128, ((ts // 2) // 128) * 128)
    return int(ct), int(ts)


def _focal_loss4_kernel(logits_ref, labels_ref, out_ref, *,
                        gamma, num_classes, seq_len, pointwise_dtype):
    x = logits_ref[...].astype(jnp.float32)       # (B, CT, TS)
    labels = labels_ref[...]                      # (B, TS) int32
    B, CT, TS = x.shape

    # log_softmax over dim 0 (batch): PyTorch legacy implicit-dim rule for 3-D
    # inputs.  B is a vreg-major axis, so this is pure VPU adds/max plus EUP
    # exp/log — no cross-lane shuffles.  Always f32 for stability.
    m = jnp.max(x, axis=0, keepdims=True)
    shifted = x - m
    lse = jnp.log(jnp.sum(jnp.exp(shifted), axis=0, keepdims=True))
    log_p = shifted - lse                         # (B, CT, TS) f32

    # Fused focal term (no materialized float one-hot, no (B,CT,TS) iota):
    #   onehot*log_p == 0 off-target, so
    #   fl = -alpha * (1 - onehot*log_p)**gamma * log_p
    #      = -alpha * log_p * where(is_target, (1 - log_p)**gamma, 1)
    # The (-alpha) scale and mean/sum are applied to the final scalar outside.
    # Pointwise math optionally runs in bf16 (v6e/v7x VPU saving); reductions
    # stay f32.
    lp = log_p.astype(pointwise_dtype)
    one = jnp.ones((), dtype=pointwise_dtype)
    c_start = pl.program_id(1) * CT
    class_iota = c_start + jax.lax.broadcasted_iota(jnp.int32, (1, CT, TS), 1)
    is_target = labels[:, None, :] == class_iota   # (B, CT, TS) via broadcast
    contrib = lp * jnp.where(is_target, _static_pow(one - lp, gamma), one)

    # Batch reduce first (f32 accumulation); OOB class rows / seq columns never
    # mix with in-range data before this point (the only reduction so far is
    # over B at fixed (c, s)).
    red = jnp.sum(contrib, axis=0, dtype=jnp.float32)   # (CT, TS)

    # Padded-tail masks on the reduced plane only (selects, so NaN/Inf garbage
    # in OOB regions is discarded — do not turn these into 0/1 multiplies).
    ok = None
    if num_classes % CT != 0:
        row = c_start + jax.lax.broadcasted_iota(jnp.int32, (CT, 1), 0)
        ok = row < num_classes
    if seq_len % TS != 0:
        col = (pl.program_id(0) * TS
               + jax.lax.broadcasted_iota(jnp.int32, (1, TS), 1))
        ok_s = col < seq_len
        ok = ok_s if ok is None else (ok & ok_s)
    if ok is not None:
        red = jnp.where(ok, red, jnp.float32(0.0))

    # Cheap reductions only: fold TS lanes down to 128 with aligned lane-tile
    # adds, then fold the class rows down to 8 sublanes (all VPU).  The tiny
    # final cross-lane reduce of the (8,128) partials happens in the wrapper.
    part = red[:, 0:128]
    for t in range(1, TS // 128):
        part = part + red[:, t * 128:(t + 1) * 128]       # (CT, 128)

    full = (CT // 8) * 8
    if full:
        rows = part[0:8, :]
        for t in range(1, full // 8):
            rows = rows + part[t * 8:(t + 1) * 8, :]
        out_ref[...] = rows                                # (8, 128)
    else:
        out_ref[...] = jnp.zeros_like(out_ref)
    if CT % 8 != 0:
        rem = CT % 8
        out_ref[0:rem, :] = out_ref[0:rem, :] + part[full:CT, :]


def focal_loss4(logits, labels, *, gamma=2, alpha=1.0, size_average=True,
                seq_tile=None, class_tile=None, pointwise_dtype=None):
    """Pallas TPU implementation of FocalLoss4.forward for 3-D logits / 2-D labels."""
    logits = jnp.asarray(logits)
    labels = jnp.asarray(labels)
    # TODO(synk): the module's >3-D logits / >2-D labels pre-flatten/transpose
    # path is not implemented; inputs must already be (B, C, S) / (B, S).
    assert logits.ndim == 3, "expected logits (batch, labels_length, seq_length)"
    B, C, S = logits.shape
    assert labels.shape == (B, S), "expected labels (batch, seq_length)"

    itemsize = jnp.dtype(logits.dtype).itemsize
    vmem_limit, tile_budget = _vmem_budgets()
    auto_ct, auto_ts = _choose_tiles(B, C, S, itemsize, tile_budget)
    TS = int(seq_tile) if seq_tile is not None else auto_ts
    CT = int(class_tile) if class_tile is not None else auto_ct
    assert TS % 128 == 0, "seq tile must be a multiple of 128 lanes"
    assert CT == C or (CT % 8 == 0 and CT <= C), (
        "class tile must be the full C, or a multiple of 8 that is <= C")

    num_s = pl.cdiv(S, TS)
    num_c = pl.cdiv(C, CT)
    pw_dtype = jnp.float32 if pointwise_dtype is None else jnp.dtype(pointwise_dtype)

    kernel = functools.partial(_focal_loss4_kernel, gamma=gamma,
                               num_classes=C, seq_len=S,
                               pointwise_dtype=pw_dtype)

    out_bytes = num_c * 8 * num_s * 128 * 4
    cost = pl.CostEstimate(
        flops=int(10 * B * C * S),
        transcendentals=int(2 * B * C * S),
        bytes_accessed=int(B * C * S * itemsize + num_c * B * S * 4 + out_bytes),
    )

    partials = pl.pallas_call(
        kernel,
        out_shape=jax.ShapeDtypeStruct((8 * num_c, 128 * num_s), jnp.float32),
        grid_spec=pltpu.PrefetchScalarGridSpec(
            num_scalar_prefetch=0,
            # Class axis innermost so the labels block index is constant across
            # consecutive steps (no redundant labels DMA per class tile).
            grid=(num_s, num_c),
            in_specs=[
                # logits: tile C and S; B stays whole (softmax reduction axis).
                pl.BlockSpec((B, CT, TS), lambda si, ci: (0, ci, si)),
                # labels: matching seq tile, independent of the class tile.
                pl.BlockSpec((B, TS), lambda si, ci: (0, si)),
            ],
            # One lane-dense (8, 128) f32 partial block per grid step.
            out_specs=pl.BlockSpec((8, 128), lambda si, ci: (ci, si)),
        ),
        compiler_params=pltpu.CompilerParams(
            dimension_semantics=("parallel", "parallel"),
            vmem_limit_bytes=vmem_limit,
        ),
        cost_estimate=cost,
    )(logits, labels.astype(jnp.int32))

    total = -jnp.float32(alpha) * jnp.sum(partials)
    if size_average:
        total = total / jnp.float32(B * C * S)
    return total


def _focal_loss4_ref(logits, labels, *, gamma=2, alpha=1.0, size_average=True):
    """Pure-JAX reference mirroring the PyTorch forward (for verification)."""
    B, C, S = logits.shape
    onehot = jax.nn.one_hot(labels, C, axis=1, dtype=jnp.float32)   # (B, C, S)
    log_p = jax.nn.log_softmax(logits.astype(jnp.float32), axis=0)  # implicit dim=0
    fl = -alpha * (1.0 - onehot * log_p) ** gamma * log_p
    return jnp.mean(fl) if size_average else jnp.sum(fl)


if __name__ == "__main__":
    key = jax.random.PRNGKey(0)
    k1, k2, k3, k4 = jax.random.split(key, 4)

    B, C, S = 2, 4, 512   # batch, labels_length (classes), seq_length
    logits = jax.random.normal(k1, (B, C, S), dtype=jnp.float32)
    labels = jax.random.randint(k2, (B, S), 0, C, dtype=jnp.int32)

    # 1) Multi-tile seq grid (4 x 128), mean reduction, default gamma/alpha.
    out = focal_loss4(logits, labels, gamma=2, alpha=1.0, size_average=True,
                      seq_tile=128)
    out = jax.block_until_ready(out)
    ref = _focal_loss4_ref(logits, labels, gamma=2, alpha=1.0, size_average=True)
    assert jnp.allclose(out, ref, rtol=1e-5, atol=1e-5), (out, ref)

    # 2) bf16 logits (no wrapper upcast), auto tiles, ragged seq length
    #    (exercises the seq-tail mask), sum reduction, gamma=3, alpha=0.5.
    S2 = 200
    logits2 = jax.random.normal(k3, (B, C, S2), dtype=jnp.float32).astype(jnp.bfloat16)
    labels2 = labels[:, :S2]
    out2 = focal_loss4(logits2, labels2, gamma=3, alpha=0.5, size_average=False)
    out2 = jax.block_until_ready(out2)
    ref2 = _focal_loss4_ref(logits2, labels2, gamma=3, alpha=0.5, size_average=False)
    assert jnp.allclose(out2, ref2, rtol=1e-4, atol=1e-4), (out2, ref2)

    # 3) Class-tiled 2-D grid with both class- and seq-tail masks
    #    (C=20 with CT=8 -> 3 class tiles, S=200 with TS=128 -> 2 seq tiles).
    C3, S3 = 20, 200
    logits3 = jax.random.normal(k4, (B, C3, S3), dtype=jnp.float32)
    labels3 = jax.random.randint(k2, (B, S3), 0, C3, dtype=jnp.int32)
    out3 = focal_loss4(logits3, labels3, gamma=2, alpha=1.0, size_average=True,
                       seq_tile=128, class_tile=8)
    out3 = jax.block_until_ready(out3)
    ref3 = _focal_loss4_ref(logits3, labels3, gamma=2, alpha=1.0, size_average=True)
    assert jnp.allclose(out3, ref3, rtol=1e-5, atol=1e-5), (out3, ref3)

    # 4) bf16 pointwise focal math (v6e/v7x VALU-saving option), loose tolerance.
    out4 = focal_loss4(logits2, labels2, gamma=2, alpha=1.0, size_average=True,
                       pointwise_dtype=jnp.bfloat16)
    out4 = jax.block_until_ready(out4)
    ref4 = _focal_loss4_ref(logits2, labels2, gamma=2, alpha=1.0, size_average=True)
    assert jnp.allclose(out4, ref4, rtol=5e-2, atol=5e-2), (out4, ref4)

    print("KERNEL_OK")
</pallas_src>

<mosaic_0001>
module attributes {stable_mosaic.version = 11 : i64} {
  func.func @_focal_loss4_kernel(%arg0: i32, %arg1: i32, %arg2: memref<2x4x128xf32, #tpu.memory_space<vmem>>, %arg3: memref<2x128xi32, #tpu.memory_space<vmem>>, %arg4: memref<8x128xf32, #tpu.memory_space<vmem>>) attributes {dimension_semantics = [#tpu.dimension_semantics<parallel>, #tpu.dimension_semantics<parallel>], iteration_bounds = array<i64: 4, 1>, scalar_prefetch = 0 : i64, scratch_operands = 0 : i64, tpu.core_type = #tpu.core_type<tc>, window_params = [{transform_indices = @transform_0, window_bounds = array<i64: 2, 4, 128>}, {transform_indices = @transform_1, window_bounds = array<i64: 2, 128>}, {transform_indices = @transform_2, window_bounds = array<i64: 8, 128>}]} {
    %c0 = arith.constant 0 : index
    %c0_0 = arith.constant 0 : index
    %c0_1 = arith.constant 0 : index
    %0 = vector.load %arg2[%c0, %c0_0, %c0_1] : memref<2x4x128xf32, #tpu.memory_space<vmem>>, vector<2x4x128xf32>
    %c0_2 = arith.constant 0 : index
    %c0_3 = arith.constant 0 : index
    %1 = vector.load %arg3[%c0_2, %c0_3] : memref<2x128xi32, #tpu.memory_space<vmem>>, vector<2x128xi32>
    %cst = arith.constant dense<0xFF800000> : vector<4x128xf32>
    %2 = vector.multi_reduction <maximumf>, %0, %cst [0] : vector<2x4x128xf32> to vector<4x128xf32>
    %3 = vector.shape_cast %2 : vector<4x128xf32> to vector<1x4x128xf32>
    %4 = vector.broadcast %3 : vector<1x4x128xf32> to vector<2x4x128xf32>
    %5 = arith.subf %0, %4 : vector<2x4x128xf32>
    %6 = math.exp %5 : vector<2x4x128xf32>
    %cst_4 = arith.constant dense<0.000000e+00> : vector<4x128xf32>
    %7 = vector.multi_reduction <add>, %6, %cst_4 [0] : vector<2x4x128xf32> to vector<4x128xf32>
    %8 = vector.shape_cast %7 : vector<4x128xf32> to vector<1x4x128xf32>
    %9 = math.log %8 : vector<1x4x128xf32>
    %10 = vector.broadcast %9 : vector<1x4x128xf32> to vector<2x4x128xf32>
    %11 = arith.subf %5, %10 : vector<2x4x128xf32>
    %c4_i32 = arith.constant 4 : i32
    %12 = arith.muli %arg1, %c4_i32 : i32
    %13 = tpu.iota {dimensions = array<i32: 1>} : vector<1x4x128xi32>
    %14 = vector.broadcast %12 : i32 to vector<1x4x128xi32>
    %15 = arith.addi %14, %13 : vector<1x4x128xi32>
    %16 = vector.shape_cast %1 : vector<2x128xi32> to vector<2x1x128xi32>
    %17 = vector.broadcast %16 : vector<2x1x128xi32> to vector<2x4x128xi32>
    %18 = vector.broadcast %15 : vector<1x4x128xi32> to vector<2x4x128xi32>
    %19 = arith.cmpi eq, %17, %18 : vector<2x4x128xi32>
    %cst_5 = arith.constant 1.000000e+00 : f32
    %20 = vector.broadcast %cst_5 : f32 to vector<2x4x128xf32>
    %21 = arith.subf %20, %11 : vector<2x4x128xf32>
    %22 = arith.mulf %21, %21 : vector<2x4x128xf32>
    %cst_6 = arith.constant 1.000000e+00 : f32
    %23 = vector.broadcast %cst_6 : f32 to vector<2x4x128xf32>
    %24 = arith.select %19, %22, %23 : vector<2x4x128xi1>, vector<2x4x128xf32>
    %25 = arith.mulf %11, %24 : vector<2x4x128xf32>
    %cst_7 = arith.constant dense<0.000000e+00> : vector<4x128xf32>
    %26 = vector.multi_reduction <add>, %25, %cst_7 [0] : vector<2x4x128xf32> to vector<4x128xf32>
    %cst_8 = arith.constant 0.000000e+00 : f32
    %27 = vector.broadcast %cst_8 : f32 to vector<8x128xf32>
    %c0_9 = arith.constant 0 : index
    %c0_10 = arith.constant 0 : index
    %28 = vector.load %arg4[%c0_9, %c0_10] : memref<8x128xf32, #tpu.memory_space<vmem>>, vector<8x128xf32>
    tpu.vector_store %arg4[%c0_9, %c0_10], %27 {strides = array<i32>} : memref<8x128xf32, #tpu.memory_space<vmem>>, vector<8x128xf32>,
    %c0_11 = arith.constant 0 : index
    %c0_12 = arith.constant 0 : index
    %29 = vector.load %arg4[%c0_11, %c0_12] : memref<8x128xf32, #tpu.memory_space<vmem>>, vector<4x128xf32>
    %30 = arith.addf %29, %26 : vector<4x128xf32>
    %c0_13 = arith.constant 0 : index
    %c0_14 = arith.constant 0 : index
    %31 = vector.load %arg4[%c0_13, %c0_14] : memref<8x128xf32, #tpu.memory_space<vmem>>, vector<4x128xf32>
    tpu.vector_store %arg4[%c0_13, %c0_14], %30 {strides = array<i32>} : memref<8x128xf32, #tpu.memory_space<vmem>>, vector<4x128xf32>,
    return
  }
  func.func @transform_0(%arg0: i32, %arg1: i32) -> (i32, i32, i32) {
    %c0_i32 = arith.constant 0 : i32
    %c0_i32_0 = arith.constant 0 : i32
    return %c0_i32, %arg1, %arg0 : i32, i32, i32
  }
  func.func @transform_1(%arg0: i32, %arg1: i32) -> (i32, i32) {
    %c0_i32 = arith.constant 0 : i32
    %c0_i32_0 = arith.constant 0 : i32
    return %c0_i32, %arg0 : i32, i32
  }
  func.func @transform_2(%arg0: i32, %arg1: i32) -> (i32, i32) {
    %c0_i32 = arith.constant 0 : i32
    return %arg1, %arg0 : i32, i32
  }
}

</mosaic_0001>

<bundles_post_ra>
// kernel: tpu_custom_call.1
= control target key start
LH: loop header
LB: loop body
LE: loop exit
PB: predicated region body
PF: predicated region fallthrough
CT: control target
= control target key end

     0   :  { %s845_s0 = inlined_call_operand.hbm [shape: f32[2,4,512], index: 0, kind: input, shape index: {}]   ;;  %s846_s1 = inlined_call_operand.hbm [shape: s32[2,512], index: 1, kind: input, shape index: {}]   ;;  %s847_s2 = inlined_call_operand.hbm [shape: f32[8,512], index: 2, kind: output, shape index: {}]  }
   0x1   :  { %848 = sst [smem:[#allocation11_spill]] %s845_s0 }
   0x2   :  { %7 = vsyncpa [#allocation3], 0 }
   0x3   :  { %9 = vsyncpa [#allocation3 + $0x1], 0 }
   0x4   :  { %10 = vsyncpa [#allocation6], 0 }
   0x5   :  { %12 = vsyncpa [#allocation6 + $0x1], 0 }
   0x6   :  { %13 = vsyncpa [#allocation4], 0 }
   0x7   :  { %15 = vsyncpa [#allocation4 + $0x1], 0  ;;  %s669_s9 = smov 0   ;;  %s671_s10 = smov 0  }
   0x8   :  { %s673_s11 = smov 0   ;;  %s675_s12 = smov 0  }
   0x9   :  { %s677_s13 = smov 0   ;;  %s679_s14 = smov 0  }
   0xa LB: > { %s409_s15 = sadd.s32 4294967295, %s644_s14   ;;  %s410_s16 = sadd.s32 4294967294, %s644_s14   ;;  %s644_s14 = sphi %s679_s14, %s21_s14   ;;  %s640_s13 = sphi %s677_s13, %s860_s13   ;;  %s636_s12 = sphi %s675_s12, %s859_s12   ;;  %s632_s11 = sphi %s673_s11, %s858_s11   ;;  %s628_s10 = sphi %s671_s10, %s857_s10   ;;  %s624_s9 = sphi %s669_s9, %s856_s9  }
   0xb   : > { %s33_s17 = sadd.s32 1, %s640_s13  ;;  %s42_s18 = sadd.s32 1, %s632_s11 }
   0xc   : > { %p35_p0 = scmp.ge.s32.totalorder %s33_s17, 4  ;;  %p49_p1 = scmp.ne.s32.totalorder %s632_s11, %s628_s10 }
   0xd   : > { %p50_p2 = scmp.eq.s32.totalorder %s644_s14, 0  ;;  %p55_p3 = scmp.ne.s32.totalorder %s628_s10, %s624_s9 }
   0xe   : > { %s862_s17 = smov (%p35_p0, %s33_s17), 0  ;;  %p56_p5 = scmp.eq.s32.totalorder %s409_s15, 0 }
   0xf   : > { %p710_p4 = por %p50_p2, %p49_p1  ;;  %s38_s20 = ssub.s32 %s640_s13, %s862_s17 }
  0x10   : > { %p107_p6 = scmp.eq.s32.totalorder %s409_s15, 3  ;;  %p40_p7 = scmp.eq.s32.totalorder %s38_s20, 0 }
  0x11   : > { %p716_p8 = por %p56_p5, %p55_p3  ;;  %p113_p10 = scmp.eq.s32.totalorder %s410_s16, 3 }
  0x12   : > { %p720_p9 = por %p107_p6, %p49_p1  ;;  %p443_p12 = scmp.lt.s32.totalorder %s644_s14, 4 }
  0x13   : > { %s725_s23 = scalar_select %p40_p7, %s632_s11, %s42_s18  }
  0x14   : > { %p727_p11 = por %p113_p10, %p55_p3  ;;  %s733_s25 = sand.u32 1, %s632_s11  }
  0x15   : > { %s413_s26 = sshll.u32 %s733_s25, 3  ;;  %s414_s27 = sshll.u32 %s640_s13, 6 }
  0x16   : > { %s853_s0 = sld [smem:[#allocation11_spill]]  ;;  %s137_s3 = scalar_lea.vmem [#allocation2], %s413_s26 }
  0x17   : > { %s145_s4 = sshll.u32 %s137_s3, 4  ;;  %p742_p13 = pnand %p443_p12, %p710_p4  ;;  %s146_s4 = int_to_ptr.vmem [resolvable:$true] %s145_s4 }
  0x18   : > { %s134_s6 = scalar_lea.sflag [#allocation3], %s733_s25  ;;  %s517_s7 = scalar_lea.vmem %s146_s4, 128 }
  0x19   : > { %p506_p0 = pneg %p742_p13  ;;  %p518_p1 = scmp.ne.s32.totalorder %s146_s4, %s517_s7 }
  0x1a   : > { %s646_s8 = smov [#allocation2]  }
  0x1b   : > { %p520_p2 = pnand %p518_p1, %p506_p0  ;;  %s522_s15 = sshll.u32 %s646_s8, 4  ;;  %s523_s15 = int_to_ptr.vmem [resolvable:$false] %s522_s15 }
  0x1c   : > { %s144_s30 = scalar_lea.hbm %s853_s0, %s414_s27  ;;  %s524_s16 = scalar_lea.vmem %s523_s15, 256 }
  0x1d   : > { %p521_p3 = pneg %p520_p2  ;;  %p525_p5 = scmp.lt.s32.totalorder %s146_s4, %s523_s15 }
  0x1e   : > { %p526_p4 = scmp.lt.s32.totalorder %s524_s16, %s517_s7 }
  0x20   : > { %p527_p6 = por %p526_p4, %p525_p5 }
  0x22   : > { %p528_p7 = pnand %p527_p6, %p521_p3 }
  0x24   : > { %531 = shalt.err (!%p528_p7)
}
  0x25   : > { %s647_s18 = smov 256   ;;  %s648_s19 = smov 64  }
  0x26   : > { %s649_s20 = smov 4   ;;  %p417_p10 = scmp.ge.s32.totalorder %s644_s14, 1 }
  0x27   : > { %435 = dma.hbm_to_vmem [thread:$0]  (!%p742_p13), %s144_s30, 128, %s146_s4, %s134_s6, %s647_s18, %s648_s19, %s649_s20  }
  0x28   : > { %p171_p12 = scmp.lt.s32.totalorder %s644_s14, 5  ;;  %s415_s26 = sshll.u32 %s733_s25, 1 }
  0x29   : > { %s416_s28 = sshll.u32 %s640_s13, 5  ;;  %s159_s29 = scalar_lea.vmem [#allocation5], %s415_s26 }
  0x2a   : > { %p757_p1 = pnand %p417_p10, %p171_p12  ;;  %s166_s3 = sshll.u32 %s159_s29, 4  ;;  %s167_s3 = int_to_ptr.vmem [resolvable:$true] %s166_s3 }
  0x2b   : > { %s164_s15 = scalar_lea.hbm %s846_s1, %s416_s28  ;;  %s156_s16 = scalar_lea.sflag [#allocation6], %s733_s25 }
  0x2c   : > { %s545_s0 = scalar_lea.vmem %s167_s3, 32  ;;  %s650_s30 = smov [#allocation5]  }
  0x2d   : > { %p546_p2 = scmp.ne.s32.totalorder %s167_s3, %s545_s0  ;;  %s550_s4 = sshll.u32 %s650_s30, 4  ;;  %s551_s4 = int_to_ptr.vmem [resolvable:$false] %s550_s4 }
  0x2e   : > { %s552_s6 = scalar_lea.vmem %s551_s4, 64  ;;  %p553_p4 = scmp.lt.s32.totalorder %s167_s3, %s551_s4 }
  0x2f   : > { %p548_p3 = pnand %p546_p2, %p506_p0  ;;  %p554_p6 = scmp.lt.s32.totalorder %s552_s6, %s545_s0 }
  0x31   : > { %p549_p5 = pneg %p548_p3  ;;  %p555_p7 = por %p554_p6, %p553_p4 }
  0x33   : > { %p556_p10 = pnand %p555_p7, %p549_p5 }
  0x35   : > { %559 = shalt.err (!%p556_p10)
}
  0x36   : > { %438 = dma.hbm_to_vmem [thread:$0]  (!%p742_p13), %s164_s15, 32, %s167_s3, %s156_s16  }
  0x37   : > { %175 = sbr.rel (%p757_p1) target bundleno = 134 (0x86), region = 28  ;;  %s774_s25 = sand.u32 (!%p757_p1), 1, %s628_s10  }
  0x38   : > { %s418_s18 = sshll.u32 (!%p757_p1), %s774_s25, 3  ;;  %s178_s19 = scalar_lea.sflag (!%p757_p1), [#allocation3], %s774_s25 }
  0x39   : > { %s181_s20 = scalar_lea.vmem (!%p757_p1), [#allocation2], %s418_s18 }
  0x3c   : > { %611 = dma.done.wait (%p716_p8), %s178_s19, 128  }
  0x3d   : > { %613 = vsyncadd (%p716_p8), %s178_s19, 4294967168  ;;  %s419_s0 = sshll.u32 %s774_s25, 1  ;;  %s187_s5 = scalar_lea.sflag [#allocation6], %s774_s25 }
  0x3e   : > { %s190_s26 = scalar_lea.vmem [#allocation5], %s419_s0 }
  0x3f   : > { %615 = dma.done.wait (%p716_p8), %s187_s5, 32  }
  0x40   : > { %617 = vsyncadd (%p716_p8), %s187_s5, 4294967264  ;;  %s788_s27 = scalar_lea.vmem [#allocation7], %s418_s18  ;;  %v651_v0 = vmov 0.0   ;;  %vm219_vm0 = vcmask 1043456   ;;  %v216_v1 = vld [vmem:[%s181_s20] sm:$0xf]  ;;  %v237_v15 = vlaneseq }
  0x41   : > { %284 = vst [vmem:[%s788_s27] sm:$0xff] %v651_v0  ;;  %v217_v2 = vld [vmem:[%s181_s20 + $0x4] sm:$0xf]  ;;  %v220_v3 = vsel %vm219_vm0, %v216_v1, -inf  ;;  %v652_v16 = vmov 1966171168   ;;  %s304_s21 = sshll.u32 %s788_s27, 4  ;;  %s800_s21 = int_to_ptr.vmem [resolvable:$true] %s304_s21 }
  0x42   : > { %v221_v4 = vsel %vm219_vm0, %v217_v2, -inf  ;;  %v250_v17 = vunpack.c.l.s4 %v652_v16  ;;  %v238_v18 = vshrl.u32 %v237_v15, 7  ;;  %v421_v20 = vld.sshfl [vmem:[%s190_s26] sm:$0x11 pattern:$0x75316420] }
  0x43   : > { %v222_v5 = vmax.f32 %v220_v3, %v221_v4  ;;  %v248_v21 = vcombine.high %v421_v20, %v421_v20  ;;  %s423_s28 = sshll.u32 %s636_s12, 7  ;;  %s289_s8 = scalar_lea.sflag [#allocation4], %s774_s25 }
  0x44   : > { %v251_v19 = vunpack.c.0.s8 %v250_v17  ;;  %v265_v25 = vsub.s32 0, %v238_v18  ;;  %s302_s7 = scalar_lea.hbm %s847_s2, %s423_s28  ;;  %s560_s15 = scalar_lea.vmem %s800_s21, 128 }
  0x45   : > { %v223_v6 = vsub.f32 %v216_v1, %v222_v5  ;;  %v224_v7 = vsub.f32 %v217_v2, %v222_v5  ;;  %p561_p8 = scmp.ne.s32.totalorder %s800_s21, %s560_s15  ;;  %s653_s16 = smov [#allocation7]  }
  0x46   : > { %v254_v22 = vsub.s32 %v251_v19, %v238_v18  ;;  %s564_s12 = sshll.u32 %s653_s16, 4  ;;  %s565_s12 = int_to_ptr.vmem [resolvable:$false] %s564_s12 }
  0x47   : > { %v225_v8 = vmul.f32 1.442695, %v223_v6  ;;  %v227_v9 = vmul.f32 1.442695, %v224_v7  ;;  %p562_p13 = pnand %p561_p8, %p720_p9  ;;  %s566_s30 = scalar_lea.vmem %s565_s12, 256 }
  0x48   : > { %v255_v23 = vrot.slane %v421_v20, %v254_v22  ;;  %v262_v24 = vrot.slane %v248_v21, %v254_v22  ;;  %v285_v42 = vld [vmem:[%s788_s27] sm:$0xf]  ;;  %p567_p12 = scmp.lt.s32.totalorder %s800_s21, %s565_s12  ;;  %p568_p1 = scmp.lt.s32.totalorder %s566_s30, %s560_s15 }
  0x49   : > { %498 = vpow2.f32 %v225_v8  ;;  %p563_p0 = pneg %p562_p13 }
  0x4a   : > { %500 = vpow2.f32 %v227_v9  ;;  %v266_v28 = vrot.slane %v255_v23, %v265_v25  ;;  %v270_v29 = vrot.slane %v262_v24, %v265_v25  ;;  %p569_p2 = por %p568_p1, %p567_p12 }
  0x4c   : > { %vm271_vm1 = vcmp.eq.s32.totalorder %v266_v28, %v238_v18  ;;  %vm272_vm2 = vcmp.eq.s32.totalorder %v270_v29, %v238_v18  ;;  %p570_p3 = pnand %p569_p2, %p563_p0 }
  0x56   : > { %v499_v10 = vpop.eup %498 }
  0x57   : > { %v501_v11 = vpop.eup %500  ;;  %v229_v12 = vsel %vm219_vm0, %v499_v10, 0.0 }
  0x58   : > { %v230_v13 = vsel %vm219_vm0, %v501_v11, 0.0 }
  0x59   : > { %v231_v14 = vadd.f32 %v230_v13, %v229_v12 }
  0x5b   : > { %502 = vlog2.f32 %v231_v14 }
  0x68   : > { %v503_v26 = vpop.eup %502 }
  0x69   : > { %v233_v27 = vmul.f32 0.6931472, %v503_v26 }
  0x6b   : > { %v234_v30 = vsub.f32 %v223_v6, %v233_v27  ;;  %v235_v31 = vsub.f32 %v224_v7, %v233_v27 }
  0x6d   : > { %v273_v32 = vsub.f32 1.0, %v234_v30  ;;  %v274_v33 = vsub.f32 1.0, %v235_v31 }
  0x6f   : > { %v275_v34 = vmul.f32 %v273_v32, %v273_v32  ;;  %v276_v35 = vmul.f32 %v274_v33, %v274_v33 }
  0x71   : > { %v277_v36 = vsel %vm271_vm1, %v275_v34, 1.0  ;;  %v278_v37 = vsel %vm272_vm2, %v276_v35, 1.0 }
  0x72   : > { %v279_v38 = vmul.f32 %v277_v36, %v234_v30  ;;  %v280_v39 = vmul.f32 %v278_v37, %v235_v31 }
  0x74   : > { %v281_v40 = vsel %vm219_vm0, %v279_v38, 0.0  ;;  %v282_v41 = vsel %vm219_vm0, %v280_v39, 0.0 }
  0x75   : > { %v283_v43 = vadd.f32 %v282_v41, %v281_v40 }
  0x77   : > { %v286_v44 = vadd.f32 %v285_v42, %v283_v43 }
  0x79   : > { %287 = vst [vmem:[%s788_s27] sm:$0xf] %v286_v44 }
  0x7a   : > { %573 = shalt.err (!%p570_p3)
}
  0x7b   : > { %s574_s4 = scalar_lea.hbm %s302_s7, 128  ;;  %s578_s18 = scalar_lea.hbm %s847_s2, 512 }
  0x7c   : > { %p575_p5 = scmp.ne.s32.totalorder %s302_s7, %s574_s4  ;;  %p579_p7 = scmp.lt.s32.totalorder %s302_s7, %s847_s2 }
  0x7d   : > { %p580_p10 = scmp.lt.s32.totalorder %s578_s18, %s574_s4 }
  0x7e   : > { %p576_p4 = pnand %p575_p5, %p720_p9 }
  0x7f   : > { %p581_p8 = por %p580_p10, %p579_p7 }
  0x80   : > { %p577_p6 = pneg %p576_p4 }
  0x82   : > { %p582_p13 = pnand %p581_p8, %p577_p6 }
  0x84   : > { %585 = shalt.err (!%p582_p13)
}
  0x85   : > { %430 = dma.vmem_to_hbm [thread:$0]  (%p720_p9), %s800_s21, 128, %s302_s7, %s289_s8  }
  0x86 PF: > { %p444_p0 = scmp.ge.s32.totalorder %s644_s14, 2  ;;  %s316_s0 = sand.u32 1, %s624_s9  }
  0x87   : > { %s317_s5 = scalar_lea.sflag [#allocation4], %s316_s0 }
  0x88   : > { %p440_p12 = pnand %p444_p0, %p727_p11 }
  0x8a   : > { %p441_p1 = pneg %p440_p12 }
  0x8c   : > { %619 = dma.done.wait (%p441_p1), %s317_s5, 128  }
  0x8d   : > { %621 = vsyncadd (%p441_p1), %s317_s5, 4294967168  ;;  %s21_s14 = sadd.s32 1, %s644_s14   ;;  %s856_s9 = smov %s628_s10 }
  0x8e   : > { %p18_p2 = scmp.ge.s32.totalorder %s21_s14, 6   ;;  %s857_s10 = smov %s632_s11 }
  0x8f   : > { %s858_s11 = smov %s725_s23  ;;  %s859_s12 = smov %s640_s13 }
  0x90   : > { %s860_s13 = smov %s862_s17  ;;  %20 = sbr.rel (!%p18_p2) target bundleno = 10 (0xa), region = 86 }
  0x95   :  { %322 = vsyncpa [#allocation3], 1 }
  0x96   :  { %324 = vsyncpa [#allocation3 + $0x1], 1 }
  0x97   :  { %325 = vsyncpa [#allocation6], 1 }
  0x98   :  { %327 = vsyncpa [#allocation6 + $0x1], 1 }
  0x99   :  { %328 = vsyncpa [#allocation4], 1 }
  0x9a   :  { %330 = vsyncpa [#allocation4 + $0x1], 1 }

</bundles_post_ra>
